<compile_context>
chip_gen: v7x
topology: tpu7x:2x2x1
jax: 0.10.0
libtpu: 0.0.40
codegen_flags: <defaults>
</compile_context>

<pallas_src>
import math
import functools

import jax
import jax.numpy as jnp
from jax.experimental import pallas as pl
from jax.experimental.pallas import tpu as pltpu


# ----------------------------------------------------------------------------
# Stateless hashing for the dropout mask.
# Per-row and per-column hash vectors (tm + tk hash evaluations per grid
# step) are combined with one XOR per element, instead of a full ~15-op hash
# per element.  Identical code is used by the pure-JAX reference.
# ----------------------------------------------------------------------------
def _hash_u32(x):
    x = x ^ (x >> 16)
    x = x * jnp.uint32(0x7FEB352D)
    x = x ^ (x >> 15)
    x = x * jnp.uint32(0x846CA68B)
    x = x ^ (x >> 16)
    return x


def _row_hash(row_u32, seed_u32):
    return _hash_u32(row_u32 * jnp.uint32(0x9E3779B1)
                     ^ (seed_u32 * jnp.uint32(0xC2B2AE3D)))


def _col_hash(col_u32, seed_u32):
    return _hash_u32(col_u32 * jnp.uint32(0x85EBCA77)
                     ^ (seed_u32 * jnp.uint32(0x27D4EB2F)))


def _keep_threshold(keep_prob):
    # keep element iff (row_hash ^ col_hash) < floor(keep_prob * 2^32)
    return jnp.uint32(min(int(keep_prob * 4294967296.0), 4294967295))


# ----------------------------------------------------------------------------
# Kernel: one (i, j, k) grid step of  dropout(x) @ W (+ b)
# ----------------------------------------------------------------------------
def _linear_kernel(seed_ref, x_ref, w_ref, *rest,
                   dropout_p, training, has_bias):
    if has_bias:
        b_ref, o_ref, acc_ref = rest
    else:
        o_ref, acc_ref = rest
        b_ref = None

    i = pl.program_id(0)            # M-tile index
    k = pl.program_id(2)            # K-tile index (reduction, innermost)
    nk = pl.num_programs(2)

    @pl.when(k == 0)
    def _init():
        acc_ref[...] = jnp.zeros_like(acc_ref)

    x = x_ref[...]                  # keep input dtype -> fast MXU path
    if training and dropout_p > 0.0:
        keep_prob = 1.0 - float(dropout_p)
        tm_b, tk_b = x_ref.shape
        seed = seed_ref[0].astype(jnp.uint32)
        # Global (row, k-col) indices -> mask independent of the tiling and
        # of the output-column tile j.  Expensive mixing runs on (tm_b, 1)
        # and (1, tk_b) vectors only; per-element work is one XOR + compare.
        row = (i * tm_b + jax.lax.broadcasted_iota(jnp.int32, (tm_b, 1), 0)
               ).astype(jnp.uint32)
        col = (k * tk_b + jax.lax.broadcasted_iota(jnp.int32, (1, tk_b), 1)
               ).astype(jnp.uint32)
        bits = _row_hash(row, seed) ^ _col_hash(col, seed)   # (tm_b, tk_b)
        keep = bits < _keep_threshold(keep_prob)
        # Only zero here; the 1/keep_prob scale is applied once at finalize.
        x = jnp.where(keep, x, jnp.zeros_like(x))

    acc_ref[...] += jnp.dot(x, w_ref[...], preferred_element_type=jnp.float32)

    @pl.when(k == nk - 1)
    def _finalize():
        out = acc_ref[...]
        if training and dropout_p > 0.0:
            out = out * jnp.float32(1.0 / (1.0 - float(dropout_p)))
        if has_bias:
            out = out + b_ref[...].astype(jnp.float32)
        o_ref[...] = out.astype(o_ref.dtype)


# ----------------------------------------------------------------------------
# Wrapper
# ----------------------------------------------------------------------------
def linear_forward(x, weight, bias=None, *, dropout=0.0, training=False,
                   seed=0, tm=512, tn=512, tk=512, mxu_dtype=None):
    """Pallas equivalent of Linear.forward(input).

    mxu_dtype: optionally cast MXU operands (e.g. jnp.bfloat16) — f32
    accumulation is kept; output dtype stays x.dtype.
    """
    M, K = x.shape
    Kw, N = weight.shape
    assert K == Kw, "weight shape mismatch"
    has_bias = bias is not None
    out_dtype = x.dtype

    # Degenerate case: torch dropout(p=1.0) zeroes everything (no NaN scale).
    if training and float(dropout) >= 1.0:
        out = jnp.zeros((M, N), dtype=out_dtype)
        if has_bias:
            out = out + bias.astype(out_dtype)
        return out

    if mxu_dtype is not None and x.dtype != mxu_dtype:
        x = x.astype(mxu_dtype)
        weight = weight.astype(mxu_dtype)

    # Tile sizes: full extent for small dims (a full-dim block is always
    # legal and needs no padding), otherwise the large aligned preference.
    tm_b = M if M <= tm else tm
    tn_b = N if N <= tn else tn
    tk_b = K if K <= tk else tk

    Mp = -(-M // tm_b) * tm_b
    Np = -(-N // tn_b) * tn_b
    Kp = -(-K // tk_b) * tk_b

    # v7x has two TensorCores: if the parallel grid collapsed to one step
    # (small-M inference), split the N axis so both cores get work.
    if (Mp // tm_b) * (Np // tn_b) == 1 and tn_b % 256 == 0:
        tn_b //= 2

    # perf: jnp.pad is a full extra HBM pass; it only triggers for ragged
    # dims larger than the tile.  Pre-pad static weights once at load time
    # if that case matters for your shapes.
    xp = x if (Mp == M and Kp == K) else jnp.pad(x, ((0, Mp - M), (0, Kp - K)))
    wp = weight if (Kp == K and Np == N) else jnp.pad(
        weight, ((0, Kp - K), (0, Np - N)))

    seed_arr = jnp.asarray([seed], dtype=jnp.int32)

    in_specs = [
        pl.BlockSpec((tm_b, tk_b), lambda i, j, k, s: (i, k)),   # x tile
        pl.BlockSpec((tk_b, tn_b), lambda i, j, k, s: (k, j)),   # W tile
    ]
    args = [seed_arr, xp, wp]
    if has_bias:
        bp = bias if Np == N else jnp.pad(bias, (0, Np - N))
        in_specs.append(pl.BlockSpec((1, tn_b), lambda i, j, k, s: (0, j)))
        args.append(bp.reshape(1, Np))

    # Explicit VMEM budget: double-buffered x/W/out tiles + f32 accumulator,
    # 1.5x headroom, at least 32 MiB (lifts v5e's 16 MiB scoped default for
    # big tiles), capped at 64 MiB so it also fits v7x's physical VMEM.
    vmem_est = (2 * tm_b * tk_b * xp.dtype.itemsize
                + 2 * tk_b * tn_b * wp.dtype.itemsize
                + 2 * tm_b * tn_b * out_dtype.itemsize
                + tm_b * tn_b * 4)
    if has_bias:
        vmem_est += 2 * tn_b * 4
    vmem_limit = int(min(max(int(vmem_est * 1.5), 32 * 1024 * 1024),
                         64 * 1024 * 1024))

    kernel = functools.partial(_linear_kernel,
                               dropout_p=float(dropout),
                               training=bool(training),
                               has_bias=has_bias)

    out = pl.pallas_call(
        kernel,
        out_shape=jax.ShapeDtypeStruct((Mp, Np), out_dtype),
        grid_spec=pltpu.PrefetchScalarGridSpec(
            num_scalar_prefetch=1,                       # seed lives in SMEM
            grid=(Mp // tm_b, Np // tn_b, Kp // tk_b),   # K innermost
            in_specs=in_specs,
            out_specs=pl.BlockSpec((tm_b, tn_b), lambda i, j, k, s: (i, j)),
            scratch_shapes=[pltpu.VMEM((tm_b, tn_b), jnp.float32)],
        ),
        compiler_params=pltpu.CompilerParams(
            dimension_semantics=("parallel", "parallel", "arbitrary"),
            vmem_limit_bytes=vmem_limit),
    )(*args)

    if Mp != M or Np != N:
        out = out[:M, :N]
    return out


# ----------------------------------------------------------------------------
# Parameter init matching Linear.reset_parameters()
# ----------------------------------------------------------------------------
def init_linear_params(key, in_features, out_features, bias=False,
                       dtype=jnp.float32):
    kw, kb = jax.random.split(key)
    # kaiming_uniform_(weight, mode='fan_out', a=sqrt(5)); weight is
    # (in_features, out_features) so torch's fan_out == size(0) == in_features.
    gain = math.sqrt(2.0 / (1.0 + 5.0))
    fan_out = in_features
    bound = gain * math.sqrt(3.0 / fan_out)
    weight = jax.random.uniform(kw, (in_features, out_features), dtype,
                                -bound, bound)
    if bias:
        stdv = 1.0 / math.sqrt(out_features)   # 1/sqrt(weight.size(1))
        b = jax.random.uniform(kb, (out_features,), dtype, -stdv, stdv)
    else:
        b = None
    return weight, b


# Pure-JAX replica of the in-kernel dropout mask (for exact testing).
def _ref_dropout_mask(M, K, seed, dropout_p):
    keep_prob = 1.0 - float(dropout_p)
    seed_u = jnp.uint32(seed)
    row_h = _row_hash(jnp.arange(M, dtype=jnp.int32).astype(jnp.uint32), seed_u)
    col_h = _col_hash(jnp.arange(K, dtype=jnp.int32).astype(jnp.uint32), seed_u)
    bits = row_h[:, None] ^ col_h[None, :]
    return bits < _keep_threshold(keep_prob)


if __name__ == "__main__":
    key = jax.random.PRNGKey(0)
    k_x, k_p, k_x2, k_w2 = jax.random.split(key, 4)

    # --- small shapes matching the module's forward: (M, in) @ (in, out) ---
    M, in_features, out_features = 16, 32, 64
    dropout_p = 0.5

    x = jax.random.normal(k_x, (M, in_features), dtype=jnp.float32)

    # 1) default config: bias=False, eval mode (dropout is identity)
    w, b = init_linear_params(k_p, in_features, out_features, bias=False)
    out_eval = linear_forward(x, w, b, dropout=dropout_p, training=False)
    jax.block_until_ready(out_eval)
    assert jnp.allclose(out_eval, x @ w, atol=1e-5, rtol=1e-5), "eval mismatch"

    # 2) bias=True, eval mode
    w2, b2 = init_linear_params(k_p, in_features, out_features, bias=True)
    out_bias = linear_forward(x, w2, b2, dropout=dropout_p, training=False)
    jax.block_until_ready(out_bias)
    assert jnp.allclose(out_bias, x @ w2 + b2, atol=1e-5, rtol=1e-5), \
        "bias mismatch"

    # 3) training mode: in-kernel dropout, exactly reproducible in pure JAX
    seed = 123
    out_train = linear_forward(x, w, None, dropout=dropout_p, training=True,
                               seed=seed)
    jax.block_until_ready(out_train)
    mask = _ref_dropout_mask(M, in_features, seed, dropout_p)
    x_drop = jnp.where(mask, x, 0.0)
    ref_train = (x_drop @ w) * jnp.float32(1.0 / (1.0 - dropout_p))
    assert jnp.allclose(out_train, ref_train, atol=1e-4, rtol=1e-4), \
        "training mismatch"

    # 4) degenerate dropout=1.0 in training: zeros (+bias), no NaNs
    out_p1 = linear_forward(x, w2, b2, dropout=1.0, training=True, seed=seed)
    jax.block_until_ready(out_p1)
    assert jnp.allclose(out_p1, jnp.zeros((M, out_features)) + b2,
                        atol=1e-6), "p=1 mismatch"

    # 5) multi-tile grid: exercises the (M, N, K) tiling and f32 accumulator
    M3, K3, N3 = 256, 384, 256
    x3 = jax.random.normal(k_x2, (M3, K3), dtype=jnp.float32)
    w3 = jax.random.normal(k_w2, (K3, N3), dtype=jnp.float32) * 0.05
    out3 = linear_forward(x3, w3, None, dropout=0.0, training=False,
                          tm=128, tn=128, tk=128)
    jax.block_until_ready(out3)
    assert jnp.allclose(out3, x3 @ w3, atol=1e-4, rtol=1e-4), "tiled mismatch"

    # 6) ragged shapes under the big default tiles: full-extent blocks, no pad
    M4, K4, N4 = 300, 160, 192
    x4 = jax.random.normal(k_x, (M4, K4), dtype=jnp.float32)
    w4 = jax.random.normal(k_w2, (K4, N4), dtype=jnp.float32) * 0.05
    out4 = linear_forward(x4, w4, None)
    jax.block_until_ready(out4)
    assert jnp.allclose(out4, x4 @ w4, atol=1e-4, rtol=1e-4), "ragged mismatch"

    # 7) optional bf16 MXU operands (f32 accumulation) — fast-path check
    out_bf16 = linear_forward(x, w, None, mxu_dtype=jnp.bfloat16)
    jax.block_until_ready(out_bf16)
    assert jnp.allclose(out_bf16, x @ w, atol=1e-1, rtol=5e-2), "bf16 mismatch"

    print("KERNEL_OK")
</pallas_src>

<mosaic_0001>
module attributes {stable_mosaic.version = 11 : i64} {
  func.func @_linear_kernel(%arg0: i32, %arg1: i32, %arg2: i32, %arg3: memref<1xi32, #tpu.memory_space<smem>>, %arg4: memref<16x32xf32, #tpu.memory_space<vmem>>, %arg5: memref<32x64xf32, #tpu.memory_space<vmem>>, %arg6: memref<16x64xf32, #tpu.memory_space<vmem>>, %arg7: memref<16x64xf32, #tpu.memory_space<vmem>>) attributes {dimension_semantics = [#tpu.dimension_semantics<parallel>, #tpu.dimension_semantics<parallel>, #tpu.dimension_semantics<arbitrary>], iteration_bounds = array<i64: 1, 1, 1>, scalar_prefetch = 1 : i64, scratch_operands = 1 : i64, tpu.core_type = #tpu.core_type<tc>, window_params = [{transform_indices = @transform_0, window_bounds = array<i64: 16, 32>}, {transform_indices = @transform_1, window_bounds = array<i64: 32, 64>}, {transform_indices = @transform_2, window_bounds = array<i64: 16, 64>}]} {
    %c0_i32 = arith.constant 0 : i32
    %0 = arith.cmpi eq, %arg2, %c0_i32 : i32
    %1 = arith.extui %0 : i1 to i32
    %c0_i32_0 = arith.constant 0 : i32
    %2 = arith.cmpi ne, %1, %c0_i32_0 : i32
    scf.if %2 {
      %cst_10 = arith.constant 0.000000e+00 : f32
      %12 = vector.broadcast %cst_10 : f32 to vector<16x64xf32>
      %c0_11 = arith.constant 0 : index
      %c0_12 = arith.constant 0 : index
      %13 = vector.load %arg7[%c0_11, %c0_12] : memref<16x64xf32, #tpu.memory_space<vmem>>, vector<16x64xf32>
      tpu.vector_store %arg7[%c0_11, %c0_12], %12 {strides = array<i32>} : memref<16x64xf32, #tpu.memory_space<vmem>>, vector<16x64xf32>,
    } else {
    }
    %c0 = arith.constant 0 : index
    %c0_1 = arith.constant 0 : index
    %3 = vector.load %arg4[%c0, %c0_1] : memref<16x32xf32, #tpu.memory_space<vmem>>, vector<16x32xf32>
    %c0_2 = arith.constant 0 : index
    %c0_3 = arith.constant 0 : index
    %4 = vector.load %arg7[%c0_2, %c0_3] : memref<16x64xf32, #tpu.memory_space<vmem>>, vector<16x64xf32>
    %c0_4 = arith.constant 0 : index
    %c0_5 = arith.constant 0 : index
    %5 = vector.load %arg5[%c0_4, %c0_5] : memref<32x64xf32, #tpu.memory_space<vmem>>, vector<32x64xf32>
    %cst = arith.constant dense<0.000000e+00> : vector<16x64xf32>
    %6 = tpu.matmul %3, %5, %cst {dimension_numbers = #tpu.dot_dimension_numbers<[1], [0], [0], [1], [0, 0, 1, 1], [], []>} : vector<16x32xf32>, vector<32x64xf32>, vector<16x64xf32> -> vector<16x64xf32>
    %7 = arith.addf %4, %6 : vector<16x64xf32>
    %c0_6 = arith.constant 0 : index
    %c0_7 = arith.constant 0 : index
    %8 = vector.load %arg7[%c0_6, %c0_7] : memref<16x64xf32, #tpu.memory_space<vmem>>, vector<16x64xf32>
    tpu.vector_store %arg7[%c0_6, %c0_7], %7 {strides = array<i32>} : memref<16x64xf32, #tpu.memory_space<vmem>>, vector<16x64xf32>,
    %c0_i32_8 = arith.constant 0 : i32
    %9 = arith.cmpi eq, %arg2, %c0_i32_8 : i32
    %10 = arith.extui %9 : i1 to i32
    %c0_i32_9 = arith.constant 0 : i32
    %11 = arith.cmpi ne, %10, %c0_i32_9 : i32
    scf.if %11 {
      %c0_10 = arith.constant 0 : index
      %c0_11 = arith.constant 0 : index
      %12 = vector.load %arg7[%c0_10, %c0_11] : memref<16x64xf32, #tpu.memory_space<vmem>>, vector<16x64xf32>
      %c0_12 = arith.constant 0 : index
      %c0_13 = arith.constant 0 : index
      %13 = vector.load %arg6[%c0_12, %c0_13] : memref<16x64xf32, #tpu.memory_space<vmem>>, vector<16x64xf32>
      tpu.vector_store %arg6[%c0_12, %c0_13], %12 {strides = array<i32>} : memref<16x64xf32, #tpu.memory_space<vmem>>, vector<16x64xf32>,
    } else {
    }
    return
  }
  func.func @transform_0(%arg0: i32, %arg1: i32, %arg2: i32, %arg3: memref<1xi32, #tpu.memory_space<smem>>) -> (i32, i32) {
    %c0_i32 = arith.constant 0 : i32
    return %arg0, %arg2 : i32, i32
  }
  func.func @transform_1(%arg0: i32, %arg1: i32, %arg2: i32, %arg3: memref<1xi32, #tpu.memory_space<smem>>) -> (i32, i32) {
    %c0_i32 = arith.constant 0 : i32
    return %arg2, %arg1 : i32, i32
  }
  func.func @transform_2(%arg0: i32, %arg1: i32, %arg2: i32, %arg3: memref<1xi32, #tpu.memory_space<smem>>) -> (i32, i32) {
    %c0_i32 = arith.constant 0 : i32
    return %arg0, %arg1 : i32, i32
  }
}

</mosaic_0001>

<bundles_post_ra>
// kernel: tpu_custom_call.1
= control target key start
LH: loop header
LB: loop body
LE: loop exit
PB: predicated region body
PF: predicated region fallthrough
CT: control target
= control target key end

     0   :  { %9 = vsyncpa [#allocation6], 0  ;;  %s351_s0 = inlined_call_operand.<no memory space> [shape: s32[1], index: 0, kind: input, shape index: {}]   ;;  %s352_s1 = inlined_call_operand.hbm [shape: f32[16,32], index: 1, kind: input, shape index: {}]   ;;  %s353_s2 = inlined_call_operand.hbm [shape: f32[32,64], index: 2, kind: input, shape index: {}]   ;;  %s354_s3 = inlined_call_operand.hbm [shape: f32[16,64], index: 3, kind: output, shape index: {}]  }
   0x1   :  { %10 = vsyncpa [#allocation9], 0 }
   0x2   :  { %11 = vsyncpa [#allocation7], 0  ;;  %s274_s12 = smov [#allocation5]   ;;  %s202_s16 = scalar_lea.hbm %s352_s1, 256 }
   0x3   :  { %s17_s13 = sshll.u32 %s274_s12, 4  ;;  %p203_p0 = scmp.ne.s32.totalorder %s352_s1, %s202_s16  ;;  %s18_s13 = int_to_ptr.vmem [resolvable:$true] %s17_s13 }
   0x4   :  { %p206_p1 = scmp.lt.u32.totalorder %s202_s16, %s352_s1 }
   0x6   :  { %p208_p2 = pnand %p206_p1, %p203_p0 }
   0x8   :  { %211 = shalt.err (!%p208_p2)
}
   0x9   :  { %s212_s20 = scalar_lea.vmem %s18_s13, 256  ;;  %p217_p4 = scmp.lt.s32.totalorder %s18_s13, %s18_s13 }
   0xa   :  { %p213_p3 = scmp.ne.s32.totalorder %s18_s13, %s212_s20  ;;  %p218_p5 = scmp.lt.s32.totalorder %s212_s20, %s212_s20 }
   0xc   :  { %p219_p6 = por %p218_p5, %p217_p4 }
   0xe   :  { %p220_p7 = pnand %p219_p6, %p213_p3 }
  0x10   :  { %223 = shalt.err (!%p220_p7)
}
  0x11   :  { %s275_s21 = smov 128   ;;  %s276_s22 = smov 8  }
  0x12   :  { %23 = dma.hbm_to_vmem [thread:$0]  %s352_s1, 256, %s18_s13, [#allocation6], %s275_s21, %s275_s21, %s276_s22  }
  0x13   :  { %s277_s25 = smov [#allocation8]   ;;  %s224_s29 = scalar_lea.hbm %s353_s2, 512 }
  0x14   :  { %s29_s26 = sshll.u32 %s277_s25, 4  ;;  %p225_p8 = scmp.ne.s32.totalorder %s353_s2, %s224_s29  ;;  %s30_s26 = int_to_ptr.vmem [resolvable:$true] %s29_s26 }
  0x15   :  { %p228_p9 = scmp.lt.u32.totalorder %s224_s29, %s353_s2 }
  0x17   :  { %p230_p10 = pnand %p228_p9, %p225_p8 }
  0x19   :  { %233 = shalt.err (!%p230_p10)
}
  0x1a   :  { %s234_s7 = scalar_lea.vmem %s30_s26, 512  ;;  %p239_p12 = scmp.lt.s32.totalorder %s30_s26, %s30_s26 }
  0x1b   :  { %p235_p11 = scmp.ne.s32.totalorder %s30_s26, %s234_s7  ;;  %p240_p13 = scmp.lt.s32.totalorder %s234_s7, %s234_s7 }
  0x1d   :  { %p241_p0 = por %p240_p13, %p239_p12 }
  0x1f   :  { %p242_p1 = pnand %p241_p0, %p235_p11 }
  0x21   :  { %245 = shalt.err (!%p242_p1)
}
  0x22   :  { %35 = dma.hbm_to_vmem [thread:$0]  %s353_s2, 512, %s30_s26, [#allocation9], %s275_s21, %s275_s21, %s276_s22  }
  0x23   :  { %268 = dma.done.wait [#allocation6], 256  }
  0x24   :  { %269 = vsyncadd [#allocation6], 4294967040 }
  0x25   :  { %270 = dma.done.wait [#allocation9], 512  }
  0x26   :  { %271 = vsyncadd [#allocation9], 4294966784  ;;  %vm46_vm0 = vcmask 523264   ;;  %v278_v0 = vmov 0.0   ;;  %vm57_vm1 = vcmask 261120   ;;  %v53_v1 = vld [vmem:[#allocation8] sm:$0xff] }
  0x27   :  { %48 = vst.msk [vmem:[#allocation2 + $0x8] sm:$0xff] %vm46_vm0, %v278_v0  ;;  %47 = vst.msk [vmem:[#allocation2] sm:$0xff] %vm46_vm0, %v278_v0  ;;  %v54_v2 = vld [vmem:[#allocation8 + $0x8] sm:$0xff]  ;;  %v55_v3 = vld [vmem:[#allocation8 + $0x10] sm:$0xff]  ;;  %s279_s2 = smov [#allocation10]  }
  0x28   :  { %v188_v4 = vpack.c.bf16 %v54_v2, %v53_v1  ;;  %v56_v5 = vld [vmem:[#allocation8 + $0x18] sm:$0xff]  ;;  %v49_v6 = vld [vmem:[#allocation5] sm:$0xff]  ;;  %s156_s9 = sshll.u32 %s279_s2, 4  ;;  %s157_s9 = int_to_ptr.vmem [resolvable:$true] %s156_s9 }
  0x29   :  { %v192_v7 = vpack.c.bf16 %v56_v5, %v55_v3  ;;  %185 = vmatprep.mubr.msk.f32.mxu0 %vm57_vm1, %v49_v6  ;;  %v50_v8 = vld [vmem:[#allocation5 + $0x8] sm:$0xff]  ;;  %s246_s10 = scalar_lea.vmem %s157_s9, 256  ;;  %p251_p3 = scmp.lt.s32.totalorder %s157_s9, %s157_s9 }
  0x2a   :  { %189 = vmatprep.subr.bf16.mxu0 %v188_v4  ;;  %p247_p2 = scmp.ne.s32.totalorder %s157_s9, %s246_s10  ;;  %p252_p4 = scmp.lt.s32.totalorder %s246_s10, %s246_s10 }
  0x2b   :  { %191 = vmatpush3.bf16.msra.mxu0 %v188_v4 }
  0x2c   :  { %193 = vmatprep.subr.bf16.mxu0 %v192_v7  ;;  %p253_p5 = por %p252_p4, %p251_p3 }
  0x2e   :  { %v52_v9 = vld [vmem:[#allocation2 + $0x8] sm:$0xff]  ;;  %v51_v10 = vld [vmem:[#allocation2] sm:$0xff]  ;;  %p254_p6 = pnand %p253_p5, %p247_p2 }
  0x2f   :  { %195 = vmatpush3.bf16.msra.mxu0 %v192_v7 }
  0x32   :  { %186 = vmatmul.mubr.msk.f32.vlgmr.msra.gmra.mrb[0].mxu0 %vm57_vm1, %v50_v8 }
 0x105   :  { %v187_v11 = vpop.f32.mrb[0].mxu0 }
 0x106   :  { %v140_v12 = vadd.f32 %v187_v11, %v52_v9  ;;  %v130_v13 = vpop.f32.mrb[1].mxu0 }
 0x107   :  { %v139_v14 = vadd.f32 %v130_v13, %v51_v10 }
 0x108   :  { %143 = vst.msk [vmem:[#allocation2 + $0x8] sm:$0xff] %vm46_vm0, %v140_v12 }
 0x109   :  { %142 = vst.msk [vmem:[#allocation2] sm:$0xff] %vm46_vm0, %v139_v14 }
 0x10f   :  { %v148_v15 = vld [vmem:[#allocation2 + $0x8] sm:$0xff] }
 0x110   :  { %v147_v16 = vld [vmem:[#allocation2] sm:$0xff]  ;;  %150 = vst.msk [vmem:[#allocation10 + $0x8] sm:$0xff] %vm46_vm0, %v148_v15 }
 0x111   :  { %149 = vst.msk [vmem:[#allocation10] sm:$0xff] %vm46_vm0, %v147_v16 }
 0x112   :  { %257 = shalt.err (!%p254_p6)
}
 0x113   :  { %s258_s13 = scalar_lea.hbm %s354_s3, 256 }
 0x114   :  { %p259_p7 = scmp.ne.s32.totalorder %s354_s3, %s258_s13  ;;  %p262_p8 = scmp.lt.u32.totalorder %s258_s13, %s354_s3 }
 0x116   :  { %p264_p9 = pnand %p262_p8, %p259_p7 }
 0x118   :  { %267 = shalt.err (!%p264_p9)
}
 0x119   :  { %162 = dma.vmem_to_hbm [thread:$0]  %s157_s9, 256, %s354_s3, [#allocation7], %s275_s21, %s275_s21, %s276_s22  }
 0x11a   :  { %272 = dma.done.wait [#allocation7], 256  }
 0x11b   :  { %273 = vsyncadd [#allocation7], 4294967040 }
 0x11c   :  { %166 = vsyncpa [#allocation6], 1 }
 0x11d   :  { %167 = vsyncpa [#allocation9], 1 }
 0x11e   :  { %168 = vsyncpa [#allocation7], 1 }

</bundles_post_ra>
